<compile_context>
chip_gen: v7x
topology: tpu7x:2x2x1
jax: 0.10.0
libtpu: 0.0.40
codegen_flags: <defaults>
</compile_context>

<pallas_src>
import functools

import jax
import jax.numpy as jnp
from jax.experimental import pallas as pl
from jax.experimental.pallas import tpu as pltpu


def _round_up(x, m):
    return (x + m - 1) // m * m


def _cdiv(a, b):
    return (a + b - 1) // b


def _vmem_capacity_bytes():
    try:
        return int(pltpu.get_tpu_info().vmem_capacity_bytes)
    except Exception:
        return 64 << 20  # conservative fallback (v7x per-TC VMEM)


# ---------------------------------------------------------------------------
# Kernel bodies
# ---------------------------------------------------------------------------

def _unrolled_kernel(emb_ref, w1t_ref, b1_ref, w2t_ref, b2_ref, out_ref, *, n):
    """Small-N path: whole (n, tile_b, d) slab per grid step, one tall matmul."""
    tb = emb_ref.shape[1]
    d = emb_ref.shape[2]

    e = emb_ref[...]                                    # (n, tb, d), native dtype
    # One tall (n*tb, d) @ (d, d) matmul: W1 stays stationary in the MXU and
    # the bias broadcasts exactly once.  Collapsing the leading dims is
    # layout-free because tb is a multiple of 8.
    h = jnp.dot(e.reshape(n * tb, d), w1t_ref[...],
                preferred_element_type=jnp.float32)
    h = jnp.maximum(h + b1_ref[...], 0.0)               # (n*tb, d) f32

    acc = h[0:tb]
    for i in range(1, n):
        acc = acc + h[i * tb:(i + 1) * tb]
    layer1_mean = acc * (1.0 / n)

    g = jnp.dot(layer1_mean, w2t_ref[...],
                preferred_element_type=jnp.float32) + b2_ref[...]
    gate = jax.nn.sigmoid(g)

    offset = jnp.min(e, axis=0)                         # exact in bf16 too
    out_ref[...] = (offset * gate).astype(out_ref.dtype)


def _ngrid_kernel(emb_ref, w1t_ref, b1_ref, w2t_ref, b2_ref, out_ref,
                  acc_ref, min_ref, *, n):
    """Large-N path: conjunct axis is an inner 'arbitrary' grid axis."""
    k = pl.program_id(1)

    e = emb_ref[...]                                    # (tile_b, d)
    h = jnp.maximum(
        jnp.dot(e, w1t_ref[...], preferred_element_type=jnp.float32)
        + b1_ref[...], 0.0)

    @pl.when(k == 0)
    def _():
        acc_ref[...] = h
        min_ref[...] = e

    @pl.when(k > 0)
    def _():
        acc_ref[...] = acc_ref[...] + h
        min_ref[...] = jnp.minimum(min_ref[...], e)

    @pl.when(k == n - 1)
    def _():
        layer1_mean = acc_ref[...] * (1.0 / n)
        g = jnp.dot(layer1_mean, w2t_ref[...],
                    preferred_element_type=jnp.float32) + b2_ref[...]
        gate = jax.nn.sigmoid(g)
        out_ref[...] = (min_ref[...] * gate).astype(out_ref.dtype)


# ---------------------------------------------------------------------------
# Wrapper
# ---------------------------------------------------------------------------

def _resident_spec(shape, single_buffer):
    """BlockSpec for an operand whose block never changes across the grid."""
    idx = lambda *_: (0,) * len(shape)
    if single_buffer:
        # A constant block does not need a second pipeline buffer; only worth
        # spending it when the block is large (saves d*d*itemsize of VMEM).
        try:
            return pl.BlockSpec(shape, idx, pipeline_mode=pl.Buffered(1))
        except Exception:  # pragma: no cover - API fallback, keep default buffering
            pass
    return pl.BlockSpec(shape, idx)


def box_offset_intersection(embeddings, w1, b1, w2, b2):
    """embeddings: (N, B, D); w1/w2: (D, D) PyTorch (out,in) layout; b1/b2: (D,)."""
    n, b, d = embeddings.shape
    if n < 1:
        raise ValueError("need at least one conjunct")

    emb_dtype = embeddings.dtype
    emb_isz = jnp.dtype(emb_dtype).itemsize
    out_isz = emb_isz

    # bf16 inputs drive the MXU natively (f32 accumulation); otherwise keep the
    # nn.Linear weights in their own (f32) dtype.
    w_dtype = jnp.bfloat16 if emb_dtype == jnp.bfloat16 else jnp.dtype(w1.dtype)
    w_isz = jnp.dtype(w_dtype).itemsize

    w1t = w1.T.astype(w_dtype)
    w2t = w2.T.astype(w_dtype)
    b1_2d = b1.reshape(1, d).astype(jnp.float32)
    b2_2d = b2.reshape(1, d).astype(jnp.float32)

    # ---- VMEM-aware tile sizing ------------------------------------------
    vmem_cap = _vmem_capacity_bytes()
    budget = int(vmem_cap * 0.8)

    single_buf_weights = d >= 512
    weight_bufs = 1 if single_buf_weights else 2
    fixed_bytes = weight_bufs * 2 * d * d * w_isz + 2 * 2 * 2 * d * 4  # weights + biases

    per_row_unrolled = (2 * n * d * emb_isz   # double-buffered (n, tile_b, d) block
                        + 2 * d * out_isz     # double-buffered output block
                        + n * d * 4           # (n*tile_b, d) f32 relu intermediate
                        + 4 * d * 4)          # acc / mean / gate / min temporaries
    per_row_ngrid = (2 * d * emb_isz          # double-buffered (tile_b, d) block
                     + 2 * d * out_isz
                     + d * 4 + d * emb_isz    # acc + running-min scratch
                     + 3 * d * 4)             # temporaries

    def _max_rows(per_row):
        avail = budget - fixed_bytes
        return max(8, (avail // per_row) // 8 * 8) if avail > 0 else 8

    max_rows_unrolled = _max_rows(per_row_unrolled)
    max_rows_ngrid = _max_rows(per_row_ngrid)

    # Keep N fully unrolled only while it is small and the whole-N slab still
    # allows a reasonable batch tile; otherwise N becomes a grid axis so the
    # VMEM footprint is independent of N.
    use_ngrid = (n > 8) or (max_rows_unrolled < min(_round_up(b, 8), 128))
    row_cap = max_rows_ngrid if use_ngrid else max_rows_unrolled
    per_row = per_row_ngrid if use_ngrid else per_row_unrolled

    # ---- Batch tiling: multiple-of-8 tiles, >= 2 tiles when B allows it
    # (keeps both v7x TensorCores busy), minimal padding waste. -------------
    if b <= 8:
        tile_b, b_pad = 8, 8
    else:
        target = min(512, row_cap)
        num_t = max(2, _cdiv(b, target))
        tile_b = min(_round_up(_cdiv(b, num_t), 8), row_cap)
        b_pad = _round_up(b, tile_b)
    num_tiles = b_pad // tile_b

    # Pad only the batch axis, and only when needed (never the lane axis).
    emb_in = embeddings
    if b_pad != b:
        emb_in = jnp.pad(embeddings, ((0, 0), (0, b_pad - b), (0, 0)))

    footprint = fixed_bytes + tile_b * per_row
    vmem_limit = int(max(16 << 20, min(footprint * 5 // 4 + (2 << 20), vmem_cap)))

    cost = pl.CostEstimate(
        flops=int(2 * n * b_pad * d * d + 2 * b_pad * d * d + 4 * n * b_pad * d),
        transcendentals=int(b_pad * d),
        bytes_accessed=int(n * b_pad * d * emb_isz + 2 * d * d * w_isz
                           + 4 * d * 4 + b_pad * d * out_isz),
    )

    w_spec = _resident_spec((d, d), single_buf_weights)
    bias_spec = _resident_spec((1, d), False)

    if use_ngrid:
        kernel = functools.partial(_ngrid_kernel, n=n)
        grid_spec = pltpu.PrefetchScalarGridSpec(
            num_scalar_prefetch=0,
            grid=(num_tiles, n),
            in_specs=[
                pl.BlockSpec((None, tile_b, d), lambda i, k: (k, i, 0)),
                w_spec, bias_spec, w_spec, bias_spec,
            ],
            out_specs=pl.BlockSpec((tile_b, d), lambda i, k: (i, 0)),
            scratch_shapes=[
                pltpu.VMEM((tile_b, d), jnp.float32),   # layer-1 sum accumulator
                pltpu.VMEM((tile_b, d), emb_dtype),     # running elementwise min
            ],
        )
        dim_sem = ("parallel", "arbitrary")
    else:
        kernel = functools.partial(_unrolled_kernel, n=n)
        grid_spec = pltpu.PrefetchScalarGridSpec(
            num_scalar_prefetch=0,
            grid=(num_tiles,),
            in_specs=[
                pl.BlockSpec((n, tile_b, d), lambda i: (0, i, 0)),
                w_spec, bias_spec, w_spec, bias_spec,
            ],
            out_specs=pl.BlockSpec((tile_b, d), lambda i: (i, 0)),
        )
        dim_sem = ("parallel",)

    out_padded = pl.pallas_call(
        kernel,
        out_shape=jax.ShapeDtypeStruct((b_pad, d), emb_dtype),
        grid_spec=grid_spec,
        compiler_params=pltpu.CompilerParams(
            dimension_semantics=dim_sem,
            vmem_limit_bytes=vmem_limit,
        ),
        cost_estimate=cost,
    )(emb_in, w1t, b1_2d, w2t, b2_2d)

    return out_padded[:b] if b_pad != b else out_padded


# ---------------------------------------------------------------------------
# Reference + self-test
# ---------------------------------------------------------------------------

def _xavier_uniform(key, fan_out, fan_in, dtype=jnp.float32):
    limit = (6.0 / (fan_in + fan_out)) ** 0.5
    return jax.random.uniform(key, (fan_out, fan_in), dtype, minval=-limit, maxval=limit)


def reference(embeddings, w1, b1, w2, b2):
    layer1_act = jax.nn.relu(embeddings @ w1.T + b1)
    layer1_mean = jnp.mean(layer1_act, axis=0)
    gate = jax.nn.sigmoid(layer1_mean @ w2.T + b2)
    offset = jnp.min(embeddings, axis=0)
    return offset * gate


if __name__ == "__main__":
    key = jax.random.PRNGKey(0)
    k_emb, k_w1, k_b1, k_w2, k_b2, k_emb2 = jax.random.split(key, 6)

    N, B, D = 4, 8, 32  # num conjuncts, batch, hidden dim
    w1 = _xavier_uniform(k_w1, D, D)
    w2 = _xavier_uniform(k_w2, D, D)
    bound = 1.0 / (D ** 0.5)  # nn.Linear default bias init
    b1 = jax.random.uniform(k_b1, (D,), jnp.float32, minval=-bound, maxval=bound)
    b2 = jax.random.uniform(k_b2, (D,), jnp.float32, minval=-bound, maxval=bound)

    # Case 1: single batch tile, no padding anywhere.
    emb = jax.random.normal(k_emb, (N, B, D), jnp.float32)
    out = jax.block_until_ready(box_offset_intersection(emb, w1, b1, w2, b2))
    ref = reference(emb, w1, b1, w2, b2)
    assert out.shape == (B, D)
    assert jnp.allclose(out, ref, atol=1e-5, rtol=1e-5), "mismatch vs reference (B=8)"

    # Case 2: multiple batch tiles (exercises the grid and batch-axis padding).
    B2 = 24
    emb2 = jax.random.normal(k_emb2, (N, B2, D), jnp.float32)
    out2 = jax.block_until_ready(box_offset_intersection(emb2, w1, b1, w2, b2))
    ref2 = reference(emb2, w1, b1, w2, b2)
    assert out2.shape == (B2, D)
    assert jnp.allclose(out2, ref2, atol=1e-5, rtol=1e-5), "mismatch vs reference (B=24)"

    print("KERNEL_OK")
</pallas_src>

<mosaic_0001>
module attributes {stable_mosaic.version = 11 : i64} {
  func.func @_unrolled_kernel(%arg0: i32, %arg1: memref<4x8x32xf32, #tpu.memory_space<vmem>>, %arg2: memref<32x32xf32, #tpu.memory_space<vmem>>, %arg3: memref<1x32xf32, #tpu.memory_space<vmem>>, %arg4: memref<32x32xf32, #tpu.memory_space<vmem>>, %arg5: memref<1x32xf32, #tpu.memory_space<vmem>>, %arg6: memref<8x32xf32, #tpu.memory_space<vmem>>) attributes {dimension_semantics = [#tpu.dimension_semantics<parallel>], iteration_bounds = array<i64: 1>, scalar_prefetch = 0 : i64, scratch_operands = 0 : i64, tpu.core_type = #tpu.core_type<tc>, window_params = [{transform_indices = @transform_0, window_bounds = array<i64: 4, 8, 32>}, {pipeline_mode = #tpu.pipeline_mode<synchronous>, transform_indices = @transform_1, window_bounds = array<i64: 32, 32>}, {pipeline_mode = #tpu.pipeline_mode<synchronous>, transform_indices = @transform_2, window_bounds = array<i64: 1, 32>}, {pipeline_mode = #tpu.pipeline_mode<synchronous>, transform_indices = @transform_3, window_bounds = array<i64: 32, 32>}, {pipeline_mode = #tpu.pipeline_mode<synchronous>, transform_indices = @transform_4, window_bounds = array<i64: 1, 32>}, {transform_indices = @transform_5, window_bounds = array<i64: 8, 32>}]} {
    %c0 = arith.constant 0 : index
    %c0_0 = arith.constant 0 : index
    %c0_1 = arith.constant 0 : index
    %0 = vector.load %arg1[%c0, %c0_0, %c0_1] : memref<4x8x32xf32, #tpu.memory_space<vmem>>, vector<4x8x32xf32>
    %1 = vector.shape_cast %0 : vector<4x8x32xf32> to vector<32x32xf32>
    %c0_2 = arith.constant 0 : index
    %c0_3 = arith.constant 0 : index
    %2 = vector.load %arg2[%c0_2, %c0_3] : memref<32x32xf32, #tpu.memory_space<vmem>>, vector<32x32xf32>
    %cst = arith.constant dense<0.000000e+00> : vector<32x32xf32>
    %3 = tpu.matmul %1, %2, %cst {dimension_numbers = #tpu.dot_dimension_numbers<[1], [0], [0], [1], [0, 0, 1, 1], [], []>} : vector<32x32xf32>, vector<32x32xf32>, vector<32x32xf32> -> vector<32x32xf32>
    %c0_4 = arith.constant 0 : index
    %c0_5 = arith.constant 0 : index
    %4 = vector.load %arg3[%c0_4, %c0_5] : memref<1x32xf32, #tpu.memory_space<vmem>>, vector<1x32xf32>
    %5 = vector.broadcast %4 : vector<1x32xf32> to vector<32x32xf32>
    %6 = arith.addf %3, %5 : vector<32x32xf32>
    %cst_6 = arith.constant 0.000000e+00 : f32
    %7 = vector.broadcast %cst_6 : f32 to vector<32x32xf32>
    %8 = arith.maximumf %6, %7 : vector<32x32xf32>
    %9 = vector.extract_strided_slice %8 {offsets = [0, 0], sizes = [8, 32], strides = [1, 1]} : vector<32x32xf32> to vector<8x32xf32>
    %10 = vector.extract_strided_slice %8 {offsets = [8, 0], sizes = [8, 32], strides = [1, 1]} : vector<32x32xf32> to vector<8x32xf32>
    %11 = arith.addf %9, %10 : vector<8x32xf32>
    %12 = vector.extract_strided_slice %8 {offsets = [16, 0], sizes = [8, 32], strides = [1, 1]} : vector<32x32xf32> to vector<8x32xf32>
    %13 = arith.addf %11, %12 : vector<8x32xf32>
    %14 = vector.extract_strided_slice %8 {offsets = [24, 0], sizes = [8, 32], strides = [1, 1]} : vector<32x32xf32> to vector<8x32xf32>
    %15 = arith.addf %13, %14 : vector<8x32xf32>
    %cst_7 = arith.constant 2.500000e-01 : f32
    %16 = vector.broadcast %cst_7 : f32 to vector<8x32xf32>
    %17 = arith.mulf %15, %16 : vector<8x32xf32>
    %c0_8 = arith.constant 0 : index
    %c0_9 = arith.constant 0 : index
    %18 = vector.load %arg4[%c0_8, %c0_9] : memref<32x32xf32, #tpu.memory_space<vmem>>, vector<32x32xf32>
    %cst_10 = arith.constant dense<0.000000e+00> : vector<8x32xf32>
    %19 = tpu.matmul %17, %18, %cst_10 {dimension_numbers = #tpu.dot_dimension_numbers<[1], [0], [0], [1], [0, 0, 1, 1], [], []>} : vector<8x32xf32>, vector<32x32xf32>, vector<8x32xf32> -> vector<8x32xf32>
    %c0_11 = arith.constant 0 : index
    %c0_12 = arith.constant 0 : index
    %20 = vector.load %arg5[%c0_11, %c0_12] : memref<1x32xf32, #tpu.memory_space<vmem>>, vector<1x32xf32>
    %21 = vector.broadcast %20 : vector<1x32xf32> to vector<8x32xf32>
    %22 = arith.addf %19, %21 : vector<8x32xf32>
    %23 = arith.negf %22 : vector<8x32xf32>
    %24 = math.exp %23 : vector<8x32xf32>
    %cst_13 = arith.constant 1.000000e+00 : f32
    %25 = vector.broadcast %cst_13 : f32 to vector<8x32xf32>
    %26 = arith.addf %25, %24 : vector<8x32xf32>
    %27 = arith.divf %25, %26 : vector<8x32xf32>
    %cst_14 = arith.constant dense<0x7F800000> : vector<8x32xf32>
    %28 = vector.multi_reduction <minimumf>, %0, %cst_14 [0] : vector<4x8x32xf32> to vector<8x32xf32>
    %29 = arith.mulf %28, %27 : vector<8x32xf32>
    %c0_15 = arith.constant 0 : index
    %c0_16 = arith.constant 0 : index
    %30 = vector.load %arg6[%c0_15, %c0_16] : memref<8x32xf32, #tpu.memory_space<vmem>>, vector<8x32xf32>
    tpu.vector_store %arg6[%c0_15, %c0_16], %29 {strides = array<i32>} : memref<8x32xf32, #tpu.memory_space<vmem>>, vector<8x32xf32>,
    return
  }
  func.func @transform_0(%arg0: i32) -> (i32, i32, i32) {
    %c0_i32 = arith.constant 0 : i32
    %c0_i32_0 = arith.constant 0 : i32
    %c0_i32_1 = arith.constant 0 : i32
    return %c0_i32, %arg0, %c0_i32_0 : i32, i32, i32
  }
  func.func @transform_1(%arg0: i32) -> (i32, i32) {
    %c0_i32 = arith.constant 0 : i32
    %c0_i32_0 = arith.constant 0 : i32
    %c0_i32_1 = arith.constant 0 : i32
    return %c0_i32, %c0_i32_0 : i32, i32
  }
  func.func @transform_2(%arg0: i32) -> (i32, i32) {
    %c0_i32 = arith.constant 0 : i32
    %c0_i32_0 = arith.constant 0 : i32
    %c0_i32_1 = arith.constant 0 : i32
    return %c0_i32, %c0_i32_0 : i32, i32
  }
  func.func @transform_3(%arg0: i32) -> (i32, i32) {
    %c0_i32 = arith.constant 0 : i32
    %c0_i32_0 = arith.constant 0 : i32
    %c0_i32_1 = arith.constant 0 : i32
    return %c0_i32, %c0_i32_0 : i32, i32
  }
  func.func @transform_4(%arg0: i32) -> (i32, i32) {
    %c0_i32 = arith.constant 0 : i32
    %c0_i32_0 = arith.constant 0 : i32
    %c0_i32_1 = arith.constant 0 : i32
    return %c0_i32, %c0_i32_0 : i32, i32
  }
  func.func @transform_5(%arg0: i32) -> (i32, i32) {
    %c0_i32 = arith.constant 0 : i32
    %c0_i32_0 = arith.constant 0 : i32
    return %arg0, %c0_i32 : i32, i32
  }
}

</mosaic_0001>

<bundles_post_ra>
// kernel: tpu_custom_call.1
= control target key start
LH: loop header
LB: loop body
LE: loop exit
PB: predicated region body
PF: predicated region fallthrough
CT: control target
= control target key end

     0   :  { %10 = vsyncpa [#allocation3], 0  ;;  %s584_s0 = inlined_call_operand.hbm [shape: f32[4,8,32], index: 0, kind: input, shape index: {}]   ;;  %s585_s1 = inlined_call_operand.hbm [shape: f32[32,32], index: 1, kind: input, shape index: {}]   ;;  %s586_s2 = inlined_call_operand.vmem [shape: f32[1,32], index: 2, kind: input, shape index: {}]   ;;  %s587_s3 = inlined_call_operand.hbm [shape: f32[32,32], index: 3, kind: input, shape index: {}]   ;;  %s588_s4 = inlined_call_operand.vmem [shape: f32[1,32], index: 4, kind: input, shape index: {}]   ;;  %s589_s5 = inlined_call_operand.hbm [shape: f32[8,32], index: 5, kind: output, shape index: {}]  }
   0x1   :  { %11 = vsyncpa [#allocation6], 0 }
   0x2   :  { %12 = vsyncpa [#allocation4], 0  ;;  %s465_s18 = smov [#allocation5]   ;;  %s466_s20 = smov [#allocation2]  }
   0x3   :  { %s30_s19 = sshll.u32 %s465_s18, 4  ;;  %s18_s21 = sshll.u32 %s466_s20, 4  ;;  %s31_s19 = int_to_ptr.vmem [resolvable:$true] %s30_s19  ;;  %s504_s21 = int_to_ptr.vmem [resolvable:$true] %s18_s21 }
   0x4   :  { %s371_s24 = scalar_lea.hbm %s585_s1, 512 }
   0x5   :  { %p372_p0 = scmp.ne.s32.totalorder %s585_s1, %s371_s24  ;;  %p375_p1 = scmp.lt.u32.totalorder %s371_s24, %s585_s1 }
   0x7   :  { %p377_p2 = pnand %p375_p1, %p372_p0 }
   0x9   :  { %380 = shalt.err (!%p377_p2)
}
   0xa   :  { %s381_s29 = scalar_lea.vmem %s31_s19, 512  ;;  %p386_p4 = scmp.lt.s32.totalorder %s31_s19, %s31_s19 }
   0xb   :  { %p382_p3 = scmp.ne.s32.totalorder %s31_s19, %s381_s29  ;;  %p387_p5 = scmp.lt.s32.totalorder %s381_s29, %s381_s29 }
   0xd   :  { %p388_p6 = por %p387_p5, %p386_p4 }
   0xf   :  { %p389_p7 = pnand %p388_p6, %p382_p3 }
  0x11   :  { %392 = shalt.err (!%p389_p7)
}
  0x12   :  { %s467_s30 = smov 128   ;;  %s468_s6 = smov 8  }
  0x13   :  { %36 = dma.hbm_to_vmem [thread:$0]  %s585_s1, 512, %s31_s19, [#allocation6], %s467_s30, %s467_s30, %s468_s6  }
  0x14   :  { %s393_s11 = scalar_lea.hbm %s584_s0, 512 }
  0x15   :  { %p394_p8 = scmp.ne.s32.totalorder %s584_s0, %s393_s11  ;;  %p397_p9 = scmp.lt.u32.totalorder %s393_s11, %s584_s0 }
  0x17   :  { %p399_p10 = pnand %p397_p9, %p394_p8 }
  0x19   :  { %402 = shalt.err (!%p399_p10)
}
  0x1a   :  { %s403_s16 = scalar_lea.vmem %s504_s21, 512  ;;  %p408_p12 = scmp.lt.s32.totalorder %s504_s21, %s504_s21 }
  0x1b   :  { %p404_p11 = scmp.ne.s32.totalorder %s504_s21, %s403_s16  ;;  %p409_p13 = scmp.lt.s32.totalorder %s403_s16, %s403_s16 }
  0x1d   :  { %p410_p0 = por %p409_p13, %p408_p12 }
  0x1f   :  { %p411_p1 = pnand %p410_p0, %p404_p11 }
  0x21   :  { %414 = shalt.err (!%p411_p1)
}
  0x22   :  { %24 = dma.hbm_to_vmem [thread:$0]  %s584_s0, 512, %s504_s21, [#allocation3], %s467_s30, %s467_s30, %s468_s6  }
  0x23   :  { %s469_s18 = smov [#allocation7]   ;;  %s415_s23 = scalar_lea.hbm %s587_s3, 512 }
  0x24   :  { %s44_s19 = sshll.u32 %s469_s18, 4  ;;  %p416_p2 = scmp.ne.s32.totalorder %s587_s3, %s415_s23  ;;  %s45_s19 = int_to_ptr.vmem [resolvable:$true] %s44_s19 }
  0x25   :  { %p419_p3 = scmp.lt.u32.totalorder %s415_s23, %s587_s3 }
  0x27   :  { %p421_p4 = pnand %p419_p3, %p416_p2 }
  0x29   :  { %424 = shalt.err (!%p421_p4)
}
  0x2a   :  { %s425_s28 = scalar_lea.vmem %s45_s19, 512  ;;  %p430_p6 = scmp.lt.s32.totalorder %s45_s19, %s45_s19 }
  0x2b   :  { %p426_p5 = scmp.ne.s32.totalorder %s45_s19, %s425_s28  ;;  %p431_p7 = scmp.lt.s32.totalorder %s425_s28, %s425_s28 }
  0x2d   :  { %p432_p8 = por %p431_p7, %p430_p6 }
  0x2f   :  { %p433_p9 = pnand %p432_p8, %p426_p5 }
  0x31   :  { %436 = shalt.err (!%p433_p9)
}
  0x32   :  { %50 = dma.hbm_to_vmem [thread:$0]  %s587_s3, 512, %s45_s19, [#allocation6], %s467_s30, %s467_s30, %s468_s6  }
  0x33   :  { %459 = dma.done.wait [#allocation3], 512  }
  0x34   :  { %460 = vsyncadd [#allocation3], 4294966784 }
  0x35   :  { %461 = dma.done.wait [#allocation6], 1024  }
  0x36   :  { %462 = vsyncadd [#allocation6], 4294966272  ;;  %vm77_vm0 = vcmask 261120   ;;  %v66_v0 = vld [vmem:[#allocation5] sm:$0xff]  ;;  %v67_v1 = vld [vmem:[#allocation5 + $0x8] sm:$0xff]  ;;  %v470_v20 = vmov 0.0|0.0  }
  0x37   :  { %v68_v2 = vld [vmem:[#allocation5 + $0x10] sm:$0xff]  ;;  %v344_v3 = vpack.c.bf16 %v67_v1, %v66_v0  ;;  %v69_v4 = vld [vmem:[#allocation5 + $0x18] sm:$0xff]  ;;  %v62_v5 = vld [vmem:[#allocation2] sm:$0xff]  ;;  %352 = vmatprep.subr.bf16.mxu1 %v470_v20  ;;  %vm471_vm1 = vmmov 0   ;;  %v472_v24 = vmov 0.0   ;;  %s473_s6 = smov [#allocation8]  }
  0x38   :  { %v63_v6 = vld [vmem:[#allocation2 + $0x8] sm:$0xff]  ;;  %v348_v7 = vpack.c.bf16 %v69_v4, %v68_v2  ;;  %327 = vmatprep.mubr.msk.f32.mxu0 %vm77_vm0, %v62_v5  ;;  %v273_v8 = vsel %vm77_vm0, %v62_v5, inf  ;;  %v64_v10 = vld [vmem:[#allocation2 + $0x10] sm:$0xff]  ;;  %v65_v11 = vld [vmem:[#allocation2 + $0x18] sm:$0xff]  ;;  %341 = vmatprep.mubr.msk.f32.mxu1 %vm471_vm1, %v472_v24  ;;  %s288_s7 = sshll.u32 %s473_s6, 4  ;;  %s289_s7 = int_to_ptr.vmem [resolvable:$true] %s288_s7 }
  0x39   :  { %v274_v9 = vsel %vm77_vm0, %v63_v6, inf  ;;  %345 = vmatprep.subr.bf16.mxu0 %v344_v3  ;;  %v275_v13 = vsel %vm77_vm0, %v64_v10, inf  ;;  %v276_v14 = vsel %vm77_vm0, %v65_v11, inf  ;;  %v183_v17 = vld [vmem:[#allocation7] sm:$0xff]  ;;  %v184_v18 = vld [vmem:[#allocation7 + $0x8] sm:$0xff]  ;;  %v185_v21 = vld [vmem:[#allocation7 + $0x10] sm:$0xff]  ;;  %p442_p11 = scmp.lt.s32.totalorder %s289_s7, %s289_s7 }
  0x3a   :  { %v277_v12 = vmin.f32 %v273_v8, %v274_v9  ;;  %347 = vmatpush3.bf16.msra.mxu0 %v344_v3  ;;  %v278_v15 = vmin.f32 %v275_v13, %v276_v14  ;;  %v353_v19 = vpack.c.bf16 %v184_v18, %v183_v17  ;;  %v186_v22 = vld [vmem:[#allocation7 + $0x18] sm:$0xff]  ;;  %v298_v25 = vld [vmem:[%s586_s2] ss:$0 sm:$0xff]  ;;  %s437_s8 = scalar_lea.vmem %s289_s7, 128 }
  0x3b   :  { %349 = vmatprep.subr.bf16.mxu0 %v348_v7  ;;  %v356_v23 = vpack.c.bf16 %v186_v22, %v185_v21  ;;  %v303_v42 = vld [vmem:[%s588_s4] ss:$0 sm:$0xff]  ;;  %p438_p10 = scmp.ne.s32.totalorder %s289_s7, %s437_s8  ;;  %p443_p12 = scmp.lt.s32.totalorder %s437_s8, %s437_s8 }
  0x3c   :  { %v279_v16 = vmin.f32 %v277_v12, %v278_v15  ;;  %354 = vmatpush3.bf16.msra.mxu1 %v353_v19 }
  0x3d   :  { %355 = vmatprep.subr.bf16.mxu1 %v470_v20  ;;  %p444_p13 = por %p443_p12, %p442_p11 }
  0x3e   :  { %351 = vmatpush3.bf16.msra.mxu0 %v348_v7 }
  0x3f   :  { %p445_p0 = pnand %p444_p13, %p438_p10 }
  0x40   :  { %357 = vmatpush3.bf16.msra.mxu1 %v356_v23 }
  0x41   :  { %328 = vmatmul.mubr.msk.f32.vlgmr.msra.gmra.mrb[0].mxu0 %vm77_vm0, %v63_v6 }
  0x42   :  { %330 = vmatprep.mubr.msk.f32.mxu0 %vm77_vm0, %v64_v10 }
  0x45   :  { %331 = vmatmul.mubr.msk.f32.gmra.mrb[2].mxu0 %vm77_vm0, %v65_v11 }
 0x114   :  { %v329_v26 = vpop.f32.mrb[0].mxu0 }
 0x115   :  { %v162_v27 = vadd.f32 %v329_v26, %v298_v25  ;;  %v156_v28 = vpop.f32.mrb[1].mxu0 }
 0x116   :  { %v157_v29 = vadd.f32 %v298_v25, %v156_v28 }
 0x117   :  { %v176_v30 = vmax.f32 %v162_v27, 0.0 }
 0x118   :  { %v175_v31 = vmax.f32 %v157_v29, 0.0  ;;  %v332_v32 = vpop.f32.mrb[2].mxu0 }
 0x119   :  { %v166_v33 = vpop.f32.mrb[3].mxu0  ;;  %v172_v35 = vadd.f32 %v332_v32, %v298_v25 }
 0x11a   :  { %v179_v34 = vadd.f32 %v176_v30, %v175_v31  ;;  %v167_v36 = vadd.f32 %v298_v25, %v166_v33 }
 0x11b   :  { %v178_v38 = vmax.f32 %v172_v35, 0.0 }
 0x11c   :  { %v177_v37 = vmax.f32 %v167_v36, 0.0 }
 0x11e   :  { %v180_v39 = vadd.f32 %v179_v34, %v177_v37 }
 0x120   :  { %v181_v40 = vadd.f32 %v180_v39, %v178_v38 }
 0x122   :  { %v182_v41 = vmul.f32 0.25, %v181_v40 }
 0x124   :  { %342 = vmatmul.mubr.msk.f32.vlgmr.msra.gmra.mrb[0].mxu1 %vm77_vm0, %v182_v41 }
 0x1f7   :  { %v263_v43 = vpop.f32.mrb[0].mxu1 }
 0x1f8   :  { %v264_v44 = vadd.f32 %v303_v42, %v263_v43  ;;  %v343_v45 = vpop.f32.mrb[1].mxu1 }
 0x1fa   :  { %v305_v46 = vmul.f32 -1.442695, %v264_v44 }
 0x1fc   :  { %367 = vpow2.f32 %v305_v46 }
 0x206   :  { %v368_v47 = vpop.eup %367 }
 0x207   :  { %v270_v48 = vadd.f32 1.0, %v368_v47 }
 0x209   :  { %369 = vrcp.f32 %v270_v48 }
 0x213   :  { %v370_v49 = vpop.eup %369 }
 0x214   :  { %v280_v50 = vmul.f32 %v370_v49, %v279_v16 }
 0x216   :  { %281 = vst.msk [vmem:[#allocation8] sm:$0xff] %vm77_vm0, %v280_v50 }
 0x217   :  { %448 = shalt.err (!%p445_p0)
}
 0x218   :  { %s449_s10 = scalar_lea.hbm %s589_s5, 128 }
 0x219   :  { %p450_p1 = scmp.ne.s32.totalorder %s589_s5, %s449_s10  ;;  %p453_p2 = scmp.lt.u32.totalorder %s449_s10, %s589_s5 }
 0x21b   :  { %p455_p3 = pnand %p453_p2, %p450_p1 }
 0x21d   :  { %458 = shalt.err (!%p455_p3)
}
 0x21e   :  { %291 = dma.vmem_to_hbm [thread:$0]  %s289_s7, 128, %s589_s5, [#allocation4]  }
 0x21f   :  { %463 = dma.done.wait [#allocation4], 128  }
 0x220   :  { %464 = vsyncadd [#allocation4], 4294967168 }
 0x221   :  { %295 = vsyncpa [#allocation3], 1 }
 0x222   :  { %296 = vsyncpa [#allocation6], 1 }
 0x223   :  { %297 = vsyncpa [#allocation4], 1 }

</bundles_post_ra>
